<compile_context>
chip_gen: v5e
topology: v5e:2x2
jax: 0.10.0
libtpu: 0.0.40
codegen_flags: <defaults>
</compile_context>

<pallas_src>
import numpy as np
import jax
import jax.numpy as jnp
from jax import lax
from jax.experimental import pallas as pl
from jax.experimental.pallas import tpu as pltpu


# ----------------------------- parameter glue -------------------------------

def _grouped_conv_weight_to_dense(w, groups):
    """torch grouped-conv weight [Cout, Cin//G, KH, KW] ->
    block-diagonal dense [KH, KW, Cin, Cout] (zeros across groups)."""
    cout, cin_g, kh, kw = w.shape
    cin = cin_g * groups
    cout_g = cout // groups
    wd = jnp.zeros((kh, kw, cin, cout), w.dtype)
    for g in range(groups):
        blk = jnp.transpose(w[g * cout_g:(g + 1) * cout_g], (2, 3, 1, 0))
        wd = wd.at[:, :, g * cin_g:(g + 1) * cin_g,
                   g * cout_g:(g + 1) * cout_g].set(blk)
    return wd


def _bn_fold(gamma, beta, mean, var, eps=1e-5):
    scale = gamma / jnp.sqrt(var + eps)
    shift = beta - mean * scale
    return scale, shift


def prepare_params(conv_w, conv_b, bn0_g, bn0_b, bn0_m, bn0_v,
                   fc1_w, fc1_b, bn1_g, bn1_b, bn1_m, bn1_v,
                   fc2_w, fc2_b, *, channels, radix, cardinality,
                   Wp, Ho, Wo, eps=1e-5):
    """Fold BN / bias / GAP scaling; build the per-kh banded, radix-fused,
    lane-dense (bf16) weights. Specialized to stride=1, dilation=1."""
    # TODO(synk): radix == 1 sigmoid branch of rSoftMax is not implemented.
    assert radix > 1, "radix == 1 (sigmoid gating) path not implemented"
    KH, KW = conv_w.shape[2], conv_w.shape[3]
    G = cardinality * radix
    Cin = conv_w.shape[1] * G
    C = channels
    NC = Wo * C
    RNC = radix * NC

    wd = _grouped_conv_weight_to_dense(conv_w, G)            # [KH,KW,Cin,CR]
    s0, sh0 = _bn_fold(bn0_g, bn0_b, bn0_m, bn0_v, eps)      # [CR]
    shift0 = conv_b * s0 + sh0                               # conv bias folded into bn0 shift
    s1, sh1 = _bn_fold(bn1_g, bn1_b, bn1_m, bn1_v, eps)      # [inter]
    w1 = _grouped_conv_weight_to_dense(fc1_w, cardinality)[0, 0]   # [C, inter]
    w2 = _grouped_conv_weight_to_dense(fc2_w, cardinality)[0, 0]   # [inter, CR]

    # Band selection: S[wp, kw, wo] = 1 iff wp == wo + kw  (stride=1, dilation=1).
    S = np.zeros((Wp, KW, Wo), np.float32)
    for wo in range(Wo):
        for kw in range(KW):
            S[wo + kw, kw, wo] = 1.0
    S = jnp.asarray(S)

    # Per-kh banded weight with ALL radix splits fused into the lane dim
    # (lane order (r, wo, c)); bn0 scale folded into the columns.
    wds = wd * s0[None, None, None, :]
    band = jnp.einsum('hkic,pkw->hpiwc', wds, S)             # [KH,Wp,Cin,Wo,CR]
    band = band.reshape(KH, Wp, Cin, Wo, radix, C)
    band = jnp.transpose(band, (0, 1, 2, 4, 3, 5))           # [KH,Wp,Cin,radix,Wo,C]
    wk = band.reshape(KH, Wp * Cin, RNC).astype(jnp.bfloat16)

    # conv bias + bn0 shift tiled to the (r, wo, c) lane layout.
    sh0_comb = jnp.broadcast_to(shift0.reshape(radix, 1, C),
                                (radix, Wo, C)).reshape(1, RNC)

    # radix-sum + GAP (1/HW) + bn1 scale folded into fc1 (rows in (r,wo,c) order).
    inv_hw = 1.0 / (Ho * Wo)
    w1_eff = jnp.tile(w1 * (s1[None, :] * inv_hw),
                      (radix * Wo, 1)).astype(jnp.bfloat16)  # [RNC, inter]
    b1_eff = (fc1_b * s1 + sh1)[None, :]                     # [1, inter]

    # fc2 split per radix: [radix, inter, C], bias [radix, 1, C].
    w2_r = jnp.transpose(w2.reshape(w2.shape[0], radix, C),
                         (1, 0, 2)).astype(jnp.bfloat16)
    b2_r = fc2_b.reshape(radix, 1, C)

    # Attention broadcast matrices: t[r, c, (r',wo,c')] = (r==r') * (c==c').
    base = jnp.tile(jnp.eye(C, dtype=jnp.float32), (1, Wo))  # [C, NC]
    t = jnp.zeros((radix, C, RNC), jnp.float32)
    for r in range(radix):
        t = t.at[r, :, r * NC:(r + 1) * NC].set(base)
    t = t.astype(jnp.bfloat16)

    return dict(wk=wk, sh0=sh0_comb, w1=w1_eff, b1=b1_eff, w2=w2_r, b2=b2_r, t=t)


# --------------------------------- kernel -----------------------------------

def make_splat_kernel(radix, KH):
    def kernel(x_ref, wk_ref, sh0_ref, w1_ref, b1_ref,
               w2_ref, b2_ref, t_ref, out_ref):
        Bblk, Hp, WpCin = x_ref.shape
        Ho = Hp - KH + 1
        RNC = out_ref.shape[2]

        # --- grouped KxK conv (+ bn0 + ReLU): in-kernel im2row as KH shifted
        #     row views, one full-lane-width matmul per kh, f32 accumulation ---
        acc = None
        for kh in range(KH):
            xs = x_ref[:, kh:kh + Ho, :].reshape(Bblk * Ho, WpCin)   # bf16
            c = jnp.dot(xs, wk_ref[kh], preferred_element_type=jnp.float32)
            acc = c if acc is None else acc + c
        y = jnp.maximum(acc + sh0_ref[...], 0.0)           # [Bblk*Ho, RNC] f32
        y3 = y.reshape(Bblk, Ho, RNC)

        # --- radix-sum + GAP + fc1 + bn1 + ReLU (sum/1-over-HW folded into w1) ---
        g = jnp.sum(y3, axis=1)                            # [Bblk, RNC]
        z = jnp.maximum(
            jnp.dot(g.astype(jnp.bfloat16), w1_ref[...],
                    preferred_element_type=jnp.float32) + b1_ref[...],
            0.0)                                           # [Bblk, inter]
        zb = z.astype(jnp.bfloat16)

        # --- fc2 per radix + softmax over radix (element-wise, no lane slicing) ---
        # TODO(synk): radix == 1 sigmoid branch of rSoftMax is not implemented.
        a = [jnp.dot(zb, w2_ref[r], preferred_element_type=jnp.float32) + b2_ref[r]
             for r in range(radix)]                        # radix x [Bblk, C]
        m = a[0]
        for r in range(1, radix):
            m = jnp.maximum(m, a[r])
        e = [jnp.exp(ar - m) for ar in a]
        den = e[0]
        for r in range(1, radix):
            den = den + e[r]
        inv = pl.reciprocal(den, approx=True)              # EUP slot, off the VALU

        # --- broadcast attention onto the (r, wo, c) lanes, single fused multiply ---
        attb = None
        for r in range(radix):
            br = jnp.dot((e[r] * inv).astype(jnp.bfloat16), t_ref[r],
                         preferred_element_type=jnp.float32)   # [Bblk, RNC]
            attb = br if attb is None else attb + br
        # 128-lane, unmasked stores (radix recombination happens in the wrapper).
        out_ref[...] = (attb[:, None, :] * y3).astype(out_ref.dtype)

    return kernel


# -------------------------------- wrapper ------------------------------------

def _tensorcores_per_chip():
    """v7x exposes 2 TensorCores per chip; v5e / v6e have one."""
    try:
        kind = jax.devices()[0].device_kind.lower()
    except Exception:
        return 1
    return 2 if ("v7" in kind or "7x" in kind) else 1


def splat_conv2d(x_nchw, params, *, channels, radix, kernel_size, padding,
                 stride=1, dilation=1):
    """Forward pass of SplAtConv2d. Input/output NCHW (PyTorch convention)."""
    assert stride == 1 and dilation == 1, \
        "kernel is specialized to stride=1, dilation=1"
    B, Cin, H, W = x_nchw.shape
    KH = KW = kernel_size
    Hp, Wp = H + 2 * padding, W + 2 * padding
    Ho, Wo = Hp - KH + 1, Wp - KW + 1
    WpCin = Wp * Cin
    NC = Wo * channels
    RNC = radix * NC

    # NHWC, zero-pad, flatten (Wp, Cin) into lanes; bf16 matmul operand.
    x = jnp.transpose(x_nchw, (0, 2, 3, 1))
    xp = jnp.pad(x, ((0, 0), (padding, padding), (padding, padding), (0, 0)))
    xp = xp.reshape(B, Hp, WpCin).astype(jnp.bfloat16)

    # Chip-aware batch handling: grid over batch only when a second TensorCore
    # can take it (v7x); otherwise fold the whole batch into one invocation.
    n_blocks = B if (B > 1 and _tensorcores_per_chip() > 1) else 1
    assert B % n_blocks == 0
    Bblk = B // n_blocks

    inputs = [xp, params['wk'], params['sh0'], params['w1'], params['b1'],
              params['w2'], params['b2'], params['t']]
    in_specs = [pl.BlockSpec((Bblk, Hp, WpCin), lambda i: (i, 0, 0))]
    in_specs += [pl.BlockSpec(a.shape, lambda i, n=a.ndim: (0,) * n)
                 for a in inputs[1:]]
    out_spec = pl.BlockSpec((Bblk, Ho, RNC), lambda i: (i, 0, 0))

    out = pl.pallas_call(
        make_splat_kernel(radix, KH),
        out_shape=jax.ShapeDtypeStruct((B, Ho, RNC), jnp.float32),
        grid=(n_blocks,),
        in_specs=in_specs,
        out_specs=out_spec,
        compiler_params=pltpu.CompilerParams(
            dimension_semantics=("parallel",),      # megacore on v7x
            vmem_limit_bytes=32 * 1024 * 1024),
    )(*inputs)

    # Combined radix slab (B, Ho, radix*Wo*C) -> sum over radix -> NCHW.
    out = out.reshape(B, Ho, radix, Wo, channels).sum(axis=2)
    return jnp.transpose(out, (0, 3, 1, 2))


# ---------------------------------- demo -------------------------------------

if __name__ == "__main__":
    # module configuration
    B, Cin, H, W = 2, 4, 16, 16
    channels, radix, cardinality = 4, 2, 1
    reduction_factor = 4
    kernel_size, padding = 3, 1
    CR = channels * radix
    G = cardinality * radix
    inter = max(Cin * radix // reduction_factor, 32)     # = 32
    eps = 1e-5
    Hp, Wp = H + 2 * padding, W + 2 * padding
    Ho, Wo = Hp - kernel_size + 1, Wp - kernel_size + 1

    key = jax.random.PRNGKey(0)
    ks = jax.random.split(key, 16)

    x = jax.random.normal(ks[0], (B, Cin, H, W), jnp.float32)

    # deterministic parameters (PyTorch-layout shapes)
    conv_w = 0.2 * jax.random.normal(ks[1], (CR, Cin // G, kernel_size, kernel_size), jnp.float32)
    conv_b = 0.1 * jax.random.normal(ks[2], (CR,), jnp.float32)
    g0 = 1.0 + 0.1 * jax.random.normal(ks[3], (CR,), jnp.float32)
    b0 = 0.1 * jax.random.normal(ks[4], (CR,), jnp.float32)
    rm0 = 0.1 * jax.random.normal(ks[5], (CR,), jnp.float32)
    rv0 = 1.0 + 0.1 * jax.random.uniform(ks[6], (CR,), jnp.float32)

    fc1_w = 0.2 * jax.random.normal(ks[7], (inter, channels // cardinality, 1, 1), jnp.float32)
    fc1_b = 0.1 * jax.random.normal(ks[8], (inter,), jnp.float32)
    g1 = 1.0 + 0.1 * jax.random.normal(ks[9], (inter,), jnp.float32)
    b1 = 0.1 * jax.random.normal(ks[10], (inter,), jnp.float32)
    rm1 = 0.1 * jax.random.normal(ks[11], (inter,), jnp.float32)
    rv1 = 1.0 + 0.1 * jax.random.uniform(ks[12], (inter,), jnp.float32)

    fc2_w = 0.2 * jax.random.normal(ks[13], (CR, inter // cardinality, 1, 1), jnp.float32)
    fc2_b = 0.1 * jax.random.normal(ks[14], (CR,), jnp.float32)

    params = prepare_params(conv_w, conv_b, g0, b0, rm0, rv0,
                            fc1_w, fc1_b, g1, b1, rm1, rv1,
                            fc2_w, fc2_b,
                            channels=channels, radix=radix, cardinality=cardinality,
                            Wp=Wp, Ho=Ho, Wo=Wo, eps=eps)

    out = splat_conv2d(x, params, channels=channels, radix=radix,
                       kernel_size=kernel_size, padding=padding)
    out = jax.block_until_ready(out)

    # pure-f32 JAX reference (same semantics) for a sanity check
    s0, sh0 = _bn_fold(g0, b0, rm0, rv0, eps)
    s1, sh1 = _bn_fold(g1, b1, rm1, rv1, eps)
    w1_dense = _grouped_conv_weight_to_dense(fc1_w, cardinality)[0, 0]
    w2_dense = _grouped_conv_weight_to_dense(fc2_w, cardinality)[0, 0]

    x_nhwc = jnp.transpose(x, (0, 2, 3, 1))
    w_hwio = jnp.transpose(conv_w, (2, 3, 1, 0))                     # [KH,KW,Cin//G,CR]
    y = lax.conv_general_dilated(
        x_nhwc, w_hwio, (1, 1), ((padding, padding), (padding, padding)),
        dimension_numbers=('NHWC', 'HWIO', 'NHWC'), feature_group_count=G)
    y = jnp.maximum((y + conv_b) * s0 + sh0, 0.0)
    splits = [y[..., r * channels:(r + 1) * channels] for r in range(radix)]
    gap = sum(splits)
    gap = jnp.mean(gap, axis=(1, 2))
    z = jnp.maximum((gap @ w1_dense + fc1_b) * s1 + sh1, 0.0)
    a = (z @ w2_dense + fc2_b).reshape(B, radix, channels)
    att = jax.nn.softmax(a, axis=1)
    ref = sum(att[:, r][:, None, None, :] * splits[r] for r in range(radix))
    ref_nchw = jnp.transpose(ref, (0, 3, 1, 2))

    assert out.shape == (B, channels, H, W)
    # tolerance accounts for bf16 matmul operands (f32 accumulation) and
    # pl.reciprocal(approx=True) in the softmax vs the pure-f32 reference
    assert bool(jnp.allclose(out, ref_nchw, atol=3e-2, rtol=3e-2)), \
        "Pallas kernel does not match JAX reference"

    print("KERNEL_OK")
</pallas_src>

<mosaic_0001>
module attributes {stable_mosaic.version = 11 : i64} {
  func.func @kernel(%arg0: i32, %arg1: memref<2x18x72xbf16, #tpu.memory_space<vmem>>, %arg2: memref<3x72x128xbf16, #tpu.memory_space<vmem>>, %arg3: memref<1x128xf32, #tpu.memory_space<vmem>>, %arg4: memref<128x32xbf16, #tpu.memory_space<vmem>>, %arg5: memref<1x32xf32, #tpu.memory_space<vmem>>, %arg6: memref<2x32x4xbf16, #tpu.memory_space<vmem>>, %arg7: memref<2x1x4xf32, #tpu.memory_space<vmem>>, %arg8: memref<2x4x128xbf16, #tpu.memory_space<vmem>>, %arg9: memref<2x16x128xf32, #tpu.memory_space<vmem>>) attributes {dimension_semantics = [#tpu.dimension_semantics<parallel>], iteration_bounds = array<i64: 1>, scalar_prefetch = 0 : i64, scratch_operands = 0 : i64, tpu.core_type = #tpu.core_type<tc>, window_params = [{transform_indices = @transform_0, window_bounds = array<i64: 2, 18, 72>}, {pipeline_mode = #tpu.pipeline_mode<synchronous>, transform_indices = @transform_1, window_bounds = array<i64: 3, 72, 128>}, {pipeline_mode = #tpu.pipeline_mode<synchronous>, transform_indices = @transform_2, window_bounds = array<i64: 1, 128>}, {pipeline_mode = #tpu.pipeline_mode<synchronous>, transform_indices = @transform_3, window_bounds = array<i64: 128, 32>}, {pipeline_mode = #tpu.pipeline_mode<synchronous>, transform_indices = @transform_4, window_bounds = array<i64: 1, 32>}, {pipeline_mode = #tpu.pipeline_mode<synchronous>, transform_indices = @transform_5, window_bounds = array<i64: 2, 32, 4>}, {pipeline_mode = #tpu.pipeline_mode<synchronous>, transform_indices = @transform_6, window_bounds = array<i64: 2, 1, 4>}, {pipeline_mode = #tpu.pipeline_mode<synchronous>, transform_indices = @transform_7, window_bounds = array<i64: 2, 4, 128>}, {transform_indices = @transform_8, window_bounds = array<i64: 2, 16, 128>}]} {
    %c0 = arith.constant 0 : index
    %c0_0 = arith.constant 0 : index
    %c0_1 = arith.constant 0 : index
    %0 = vector.load %arg1[%c0, %c0_0, %c0_1] : memref<2x18x72xbf16, #tpu.memory_space<vmem>>, vector<2x16x72xbf16>
    %1 = vector.shape_cast %0 : vector<2x16x72xbf16> to vector<32x72xbf16>
    %c0_2 = arith.constant 0 : index
    %c0_3 = arith.constant 0 : index
    %c0_4 = arith.constant 0 : index
    %2 = vector.load %arg2[%c0_2, %c0_3, %c0_4] : memref<3x72x128xbf16, #tpu.memory_space<vmem>>, vector<1x72x128xbf16>
    %3 = vector.shape_cast %2 : vector<1x72x128xbf16> to vector<72x128xbf16>
    %cst = arith.constant dense<0.000000e+00> : vector<32x128xf32>
    %4 = tpu.matmul %1, %3, %cst {dimension_numbers = #tpu.dot_dimension_numbers<[1], [0], [0], [1], [0, 0, 1, 1], [], []>} : vector<32x72xbf16>, vector<72x128xbf16>, vector<32x128xf32> -> vector<32x128xf32>
    %c0_5 = arith.constant 0 : index
    %c1 = arith.constant 1 : index
    %c0_6 = arith.constant 0 : index
    %5 = vector.load %arg1[%c0_5, %c1, %c0_6] : memref<2x18x72xbf16, #tpu.memory_space<vmem>>, vector<2x16x72xbf16>
    %6 = vector.shape_cast %5 : vector<2x16x72xbf16> to vector<32x72xbf16>
    %c1_7 = arith.constant 1 : index
    %c0_8 = arith.constant 0 : index
    %c0_9 = arith.constant 0 : index
    %7 = vector.load %arg2[%c1_7, %c0_8, %c0_9] : memref<3x72x128xbf16, #tpu.memory_space<vmem>>, vector<1x72x128xbf16>
    %8 = vector.shape_cast %7 : vector<1x72x128xbf16> to vector<72x128xbf16>
    %cst_10 = arith.constant dense<0.000000e+00> : vector<32x128xf32>
    %9 = tpu.matmul %6, %8, %cst_10 {dimension_numbers = #tpu.dot_dimension_numbers<[1], [0], [0], [1], [0, 0, 1, 1], [], []>} : vector<32x72xbf16>, vector<72x128xbf16>, vector<32x128xf32> -> vector<32x128xf32>
    %10 = arith.addf %4, %9 : vector<32x128xf32>
    %c0_11 = arith.constant 0 : index
    %c2 = arith.constant 2 : index
    %c0_12 = arith.constant 0 : index
    %11 = vector.load %arg1[%c0_11, %c2, %c0_12] : memref<2x18x72xbf16, #tpu.memory_space<vmem>>, vector<2x16x72xbf16>
    %12 = vector.shape_cast %11 : vector<2x16x72xbf16> to vector<32x72xbf16>
    %c2_13 = arith.constant 2 : index
    %c0_14 = arith.constant 0 : index
    %c0_15 = arith.constant 0 : index
    %13 = vector.load %arg2[%c2_13, %c0_14, %c0_15] : memref<3x72x128xbf16, #tpu.memory_space<vmem>>, vector<1x72x128xbf16>
    %14 = vector.shape_cast %13 : vector<1x72x128xbf16> to vector<72x128xbf16>
    %cst_16 = arith.constant dense<0.000000e+00> : vector<32x128xf32>
    %15 = tpu.matmul %12, %14, %cst_16 {dimension_numbers = #tpu.dot_dimension_numbers<[1], [0], [0], [1], [0, 0, 1, 1], [], []>} : vector<32x72xbf16>, vector<72x128xbf16>, vector<32x128xf32> -> vector<32x128xf32>
    %16 = arith.addf %10, %15 : vector<32x128xf32>
    %c0_17 = arith.constant 0 : index
    %c0_18 = arith.constant 0 : index
    %17 = vector.load %arg3[%c0_17, %c0_18] : memref<1x128xf32, #tpu.memory_space<vmem>>, vector<1x128xf32>
    %18 = vector.broadcast %17 : vector<1x128xf32> to vector<32x128xf32>
    %19 = arith.addf %16, %18 : vector<32x128xf32>
    %cst_19 = arith.constant 0.000000e+00 : f32
    %20 = vector.broadcast %cst_19 : f32 to vector<32x128xf32>
    %21 = arith.maximumf %19, %20 : vector<32x128xf32>
    %22 = vector.shape_cast %21 : vector<32x128xf32> to vector<2x16x128xf32>
    %cst_20 = arith.constant dense<0.000000e+00> : vector<2x128xf32>
    %23 = vector.multi_reduction <add>, %22, %cst_20 [1] : vector<2x16x128xf32> to vector<2x128xf32>
    %24 = arith.truncf %23 : vector<2x128xf32> to vector<2x128xbf16>
    %c0_21 = arith.constant 0 : index
    %c0_22 = arith.constant 0 : index
    %25 = vector.load %arg4[%c0_21, %c0_22] : memref<128x32xbf16, #tpu.memory_space<vmem>>, vector<128x32xbf16>
    %cst_23 = arith.constant dense<0.000000e+00> : vector<2x32xf32>
    %26 = tpu.matmul %24, %25, %cst_23 {dimension_numbers = #tpu.dot_dimension_numbers<[1], [0], [0], [1], [0, 0, 1, 1], [], []>} : vector<2x128xbf16>, vector<128x32xbf16>, vector<2x32xf32> -> vector<2x32xf32>
    %c0_24 = arith.constant 0 : index
    %c0_25 = arith.constant 0 : index
    %27 = vector.load %arg5[%c0_24, %c0_25] : memref<1x32xf32, #tpu.memory_space<vmem>>, vector<1x32xf32>
    %28 = vector.broadcast %27 : vector<1x32xf32> to vector<2x32xf32>
    %29 = arith.addf %26, %28 : vector<2x32xf32>
    %cst_26 = arith.constant 0.000000e+00 : f32
    %30 = vector.broadcast %cst_26 : f32 to vector<2x32xf32>
    %31 = arith.maximumf %29, %30 : vector<2x32xf32>
    %32 = arith.truncf %31 : vector<2x32xf32> to vector<2x32xbf16>
    %c0_27 = arith.constant 0 : index
    %c0_28 = arith.constant 0 : index
    %c0_29 = arith.constant 0 : index
    %33 = vector.load %arg6[%c0_27, %c0_28, %c0_29] : memref<2x32x4xbf16, #tpu.memory_space<vmem>>, vector<1x32x4xbf16>
    %34 = vector.shape_cast %33 : vector<1x32x4xbf16> to vector<32x4xbf16>
    %cst_30 = arith.constant dense<0.000000e+00> : vector<2x4xf32>
    %35 = tpu.matmul %32, %34, %cst_30 {dimension_numbers = #tpu.dot_dimension_numbers<[1], [0], [0], [1], [0, 0, 1, 1], [], []>} : vector<2x32xbf16>, vector<32x4xbf16>, vector<2x4xf32> -> vector<2x4xf32>
    %c0_31 = arith.constant 0 : index
    %c0_32 = arith.constant 0 : index
    %c0_33 = arith.constant 0 : index
    %36 = vector.load %arg7[%c0_31, %c0_32, %c0_33] : memref<2x1x4xf32, #tpu.memory_space<vmem>>, vector<1x1x4xf32>
    %37 = vector.shape_cast %36 : vector<1x1x4xf32> to vector<1x4xf32>
    %38 = vector.broadcast %37 : vector<1x4xf32> to vector<2x4xf32>
    %39 = arith.addf %35, %38 : vector<2x4xf32>
    %c1_34 = arith.constant 1 : index
    %c0_35 = arith.constant 0 : index
    %c0_36 = arith.constant 0 : index
    %40 = vector.load %arg6[%c1_34, %c0_35, %c0_36] : memref<2x32x4xbf16, #tpu.memory_space<vmem>>, vector<1x32x4xbf16>
    %41 = vector.shape_cast %40 : vector<1x32x4xbf16> to vector<32x4xbf16>
    %cst_37 = arith.constant dense<0.000000e+00> : vector<2x4xf32>
    %42 = tpu.matmul %32, %41, %cst_37 {dimension_numbers = #tpu.dot_dimension_numbers<[1], [0], [0], [1], [0, 0, 1, 1], [], []>} : vector<2x32xbf16>, vector<32x4xbf16>, vector<2x4xf32> -> vector<2x4xf32>
    %c1_38 = arith.constant 1 : index
    %c0_39 = arith.constant 0 : index
    %c0_40 = arith.constant 0 : index
    %43 = vector.load %arg7[%c1_38, %c0_39, %c0_40] : memref<2x1x4xf32, #tpu.memory_space<vmem>>, vector<1x1x4xf32>
    %44 = vector.shape_cast %43 : vector<1x1x4xf32> to vector<1x4xf32>
    %45 = vector.broadcast %44 : vector<1x4xf32> to vector<2x4xf32>
    %46 = arith.addf %42, %45 : vector<2x4xf32>
    %47 = arith.maximumf %39, %46 : vector<2x4xf32>
    %48 = arith.subf %39, %47 : vector<2x4xf32>
    %49 = math.exp %48 : vector<2x4xf32>
    %50 = arith.subf %46, %47 : vector<2x4xf32>
    %51 = math.exp %50 : vector<2x4xf32>
    %52 = arith.addf %49, %51 : vector<2x4xf32>
    %53 = tpu.reciprocal %52 {approx = true} : vector<2x4xf32> -> vector<2x4xf32>
    %54 = arith.mulf %49, %53 : vector<2x4xf32>
    %55 = arith.truncf %54 : vector<2x4xf32> to vector<2x4xbf16>
    %c0_41 = arith.constant 0 : index
    %c0_42 = arith.constant 0 : index
    %c0_43 = arith.constant 0 : index
    %56 = vector.load %arg8[%c0_41, %c0_42, %c0_43] : memref<2x4x128xbf16, #tpu.memory_space<vmem>>, vector<1x4x128xbf16>
    %57 = vector.shape_cast %56 : vector<1x4x128xbf16> to vector<4x128xbf16>
    %cst_44 = arith.constant dense<0.000000e+00> : vector<2x128xf32>
    %58 = tpu.matmul %55, %57, %cst_44 {dimension_numbers = #tpu.dot_dimension_numbers<[1], [0], [0], [1], [0, 0, 1, 1], [], []>} : vector<2x4xbf16>, vector<4x128xbf16>, vector<2x128xf32> -> vector<2x128xf32>
    %59 = arith.mulf %51, %53 : vector<2x4xf32>
    %60 = arith.truncf %59 : vector<2x4xf32> to vector<2x4xbf16>
    %c1_45 = arith.constant 1 : index
    %c0_46 = arith.constant 0 : index
    %c0_47 = arith.constant 0 : index
    %61 = vector.load %arg8[%c1_45, %c0_46, %c0_47] : memref<2x4x128xbf16, #tpu.memory_space<vmem>>, vector<1x4x128xbf16>
    %62 = vector.shape_cast %61 : vector<1x4x128xbf16> to vector<4x128xbf16>
    %cst_48 = arith.constant dense<0.000000e+00> : vector<2x128xf32>
    %63 = tpu.matmul %60, %62, %cst_48 {dimension_numbers = #tpu.dot_dimension_numbers<[1], [0], [0], [1], [0, 0, 1, 1], [], []>} : vector<2x4xbf16>, vector<4x128xbf16>, vector<2x128xf32> -> vector<2x128xf32>
    %64 = arith.addf %58, %63 : vector<2x128xf32>
    %65 = vector.shape_cast %64 : vector<2x128xf32> to vector<2x1x128xf32>
    %66 = vector.broadcast %65 : vector<2x1x128xf32> to vector<2x16x128xf32>
    %67 = arith.mulf %66, %22 : vector<2x16x128xf32>
    %c0_49 = arith.constant 0 : index
    %c0_50 = arith.constant 0 : index
    %c0_51 = arith.constant 0 : index
    %68 = vector.load %arg9[%c0_49, %c0_50, %c0_51] : memref<2x16x128xf32, #tpu.memory_space<vmem>>, vector<2x16x128xf32>
    tpu.vector_store %arg9[%c0_49, %c0_50, %c0_51], %67 {strides = array<i32>} : memref<2x16x128xf32, #tpu.memory_space<vmem>>, vector<2x16x128xf32>,
    return
  }
  func.func @transform_0(%arg0: i32) -> (i32, i32, i32) {
    %c0_i32 = arith.constant 0 : i32
    %c0_i32_0 = arith.constant 0 : i32
    %c0_i32_1 = arith.constant 0 : i32
    return %arg0, %c0_i32, %c0_i32_0 : i32, i32, i32
  }
  func.func @transform_1(%arg0: i32) -> (i32, i32, i32) {
    %c0_i32 = arith.constant 0 : i32
    %c0_i32_0 = arith.constant 0 : i32
    %c0_i32_1 = arith.constant 0 : i32
    %c0_i32_2 = arith.constant 0 : i32
    return %c0_i32, %c0_i32_0, %c0_i32_1 : i32, i32, i32
  }
  func.func @transform_2(%arg0: i32) -> (i32, i32) {
    %c0_i32 = arith.constant 0 : i32
    %c0_i32_0 = arith.constant 0 : i32
    %c0_i32_1 = arith.constant 0 : i32
    return %c0_i32, %c0_i32_0 : i32, i32
  }
  func.func @transform_3(%arg0: i32) -> (i32, i32) {
    %c0_i32 = arith.constant 0 : i32
    %c0_i32_0 = arith.constant 0 : i32
    %c0_i32_1 = arith.constant 0 : i32
    return %c0_i32, %c0_i32_0 : i32, i32
  }
  func.func @transform_4(%arg0: i32) -> (i32, i32) {
    %c0_i32 = arith.constant 0 : i32
    %c0_i32_0 = arith.constant 0 : i32
    %c0_i32_1 = arith.constant 0 : i32
    return %c0_i32, %c0_i32_0 : i32, i32
  }
  func.func @transform_5(%arg0: i32) -> (i32, i32, i32) {
    %c0_i32 = arith.constant 0 : i32
    %c0_i32_0 = arith.constant 0 : i32
    %c0_i32_1 = arith.constant 0 : i32
    %c0_i32_2 = arith.constant 0 : i32
    return %c0_i32, %c0_i32_0, %c0_i32_1 : i32, i32, i32
  }
  func.func @transform_6(%arg0: i32) -> (i32, i32, i32) {
    %c0_i32 = arith.constant 0 : i32
    %c0_i32_0 = arith.constant 0 : i32
    %c0_i32_1 = arith.constant 0 : i32
    %c0_i32_2 = arith.constant 0 : i32
    return %c0_i32, %c0_i32_0, %c0_i32_1 : i32, i32, i32
  }
  func.func @transform_7(%arg0: i32) -> (i32, i32, i32) {
    %c0_i32 = arith.constant 0 : i32
    %c0_i32_0 = arith.constant 0 : i32
    %c0_i32_1 = arith.constant 0 : i32
    %c0_i32_2 = arith.constant 0 : i32
    return %c0_i32, %c0_i32_0, %c0_i32_1 : i32, i32, i32
  }
  func.func @transform_8(%arg0: i32) -> (i32, i32, i32) {
    %c0_i32 = arith.constant 0 : i32
    %c0_i32_0 = arith.constant 0 : i32
    %c0_i32_1 = arith.constant 0 : i32
    return %arg0, %c0_i32, %c0_i32_0 : i32, i32, i32
  }
}

</mosaic_0001>

<bundles_post_ra>
// kernel: tpu_custom_call.1
= control target key start
LH: loop header
LB: loop body
LE: loop exit
PB: predicated region body
PF: predicated region fallthrough
CT: control target
= control target key end

     0   :  { %13 = vsyncpa [#allocation3], 0  ;;  %s1048_s0 = inlined_call_operand.vmem [shape: bf16[2,18,72], index: 0, kind: input, shape index: {}]   ;;  %s1049_s1 = inlined_call_operand.hbm [shape: bf16[3,72,128], index: 1, kind: input, shape index: {}]   ;;  %s1050_s2 = inlined_call_operand.vmem [shape: f32[1,128], index: 2, kind: input, shape index: {}]   ;;  %s1051_s3 = inlined_call_operand.vmem [shape: bf16[128,32], index: 3, kind: input, shape index: {}]   ;;  %s1052_s4 = inlined_call_operand.vmem [shape: f32[1,32], index: 4, kind: input, shape index: {}]   ;;  %s1053_s5 = inlined_call_operand.vmem [shape: bf16[2,32,4], index: 5, kind: input, shape index: {}]   ;;  %s1054_s6 = inlined_call_operand.vmem [shape: f32[2,1,4], index: 6, kind: input, shape index: {}]   ;;  %s1055_s7 = inlined_call_operand.vmem [shape: bf16[2,4,128], index: 7, kind: input, shape index: {}]   ;;  %s1056_s8 = inlined_call_operand.hbm [shape: f32[2,16,128], index: 8, kind: output, shape index: {}]  }
   0x1   :  { %14 = vsyncpa [#allocation4], 0  ;;  %s21_s29 = sshll.u32 %s1049_s1, 4  ;;  %s845_s30 = smov [#allocation2]   ;;  %s22_s29 = int_to_ptr.hbm [resolvable:$true] %s21_s29 }
   0x2   :  { %s23_s9 = sshll.u32 %s845_s30, 4  ;;  %s846_s10 = smov 64   ;;  %s24_s9 = int_to_ptr.vmem [resolvable:$true] %s23_s9 }
   0x3   :  { %s847_s11 = smov 4  }
   0x4   :  { %29 = dma.hbm_to_vmem [thread:$0]  %s22_s29, 1728, %s24_s9, [#allocation3], %s846_s10, %s846_s10, %s847_s11  }
   0x5   :  { %841 = dma.done.wait [#allocation3], 1728  }
   0x6   :  { %842 = vsyncadd [#allocation3], 4294965568  ;;  %v122_v0 = vld [vmem:[#allocation2 + $0x44] sm:$0xf]  ;;  %v59_v1 = vld [vmem:[#allocation2 + $0x20] sm:$0xf] }
   0x7   :  { %v283_v2 = vld [vmem:[#allocation2 + $0x68] sm:$0xf]  ;;  %v146_v3 = vunpack.c.l.b16 %v122_v0  ;;  %v213_v4 = vunpack.c.l.b16 %v59_v1  ;;  %vm163_vm0 = vcmask 1043456   ;;  %vm62_vm1 = vsmask.f32 3328  ;;  %v760_v9 = vld [vmem:[#allocation2 + $0x3c] sm:$0xff] }
   0x8   :  { %v307_v5 = vunpack.c.l.b16 %v283_v2  ;;  %v756_v10 = vld [vmem:[#allocation2 + $0x18] sm:$0xff]  ;;  %vm63_vm2 = vsmask.f32 7440  ;;  %vm257_vm3 = vcmask 1042432   ;;  %vm258_vm4 = vcmask 1046532   ;;  %v764_v14 = vld [vmem:[#allocation2 + $0x60] sm:$0xff] }
   0x9   :  { %v151_v6 = vpack.c.b16 %v146_v3, %v146_v3  ;;  %v218_v7 = vpack.c.b16 %v213_v4, %v213_v4  ;;  %v47_v15 = vld [vmem:[%s1048_s0] sm:$0xf]  ;;  %v48_v16 = vld [vmem:[%s1048_s0 + $0x4] sm:$0xf]  ;;  %v60_v17 = vld [vmem:[%s1048_s0 + $0x8] sm:$0x1] }
   0xa   :  { %v312_v8 = vpack.c.b16 %v307_v5, %v307_v5  ;;  %v66_v18 = vshrl.u32 %v47_v15, 16  ;;  %v69_v19 = vshll.u32 %v47_v15, 16  ;;  %v75_v20 = vshll.u32 %v48_v16, 16  ;;  %v251_v23 = vld [vmem:[%s1048_s0] sm:$0xe]  ;;  %vm913_vm5 = vmor %vm62_vm1, %vm63_vm2  ;;  %v759_v32 = vld [vmem:[#allocation2 + $0x34] sm:$0xff] }
   0xb   :  { %v165_v11 = vsel %vm163_vm0, %v151_v6, 0  ;;  %v230_v12 = vsel %vm163_vm0, %v218_v7, 0  ;;  %v79_v21 = vshrl.u32 %v48_v16, 16  ;;  %v85_v22 = vshll.u32 %v60_v17, 16  ;;  %vm919_vm6 = vmor %vm257_vm3, %vm258_vm4  ;;  %v755_v33 = vld [vmem:[#allocation2 + $0x10] sm:$0xff]  ;;  %v763_v38 = vld [vmem:[#allocation2 + $0x58] sm:$0xff] }
   0xc   :  { %v324_v13 = vsel %vm163_vm0, %v312_v8, 0  ;;  %170 = vmatpush.bf16.msra.mxu0 %v165_v11  ;;  %235 = vmatpush.bf16.msra.mxu1 %v230_v12  ;;  %v262_v24 = vrot.slane %v48_v16, 5  ;;  %v68_v26 = vrot.slane %v66_v18, 4  ;;  %v71_v27 = vrot.slane %v69_v19, 5  ;;  %v49_v37 = vld [vmem:[%s1048_s0 + $0xc] sm:$0xf] }
   0xd   :  { %329 = vmatpush.bf16.msra.mxu2 %v324_v13  ;;  %v77_v28 = vrot.slane %v75_v20, 5  ;;  %v81_v29 = vrot.slane %v79_v21, 4  ;;  %v673_v31 = vrot.slane %v251_v23, 9  ;;  %v265_v36 = vrot.slane %v60_v17, 5  ;;  %v50_v41 = vld [vmem:[%s1048_s0 + $0x10] sm:$0xf] }
   0xe   :  { %v72_v34 = vor.u32 %v71_v27, %v68_v26  ;;  %v264_v35 = vrot.slane %v262_v24, 4  ;;  %v87_v40 = vrot.slane %v85_v22, 5  ;;  %v90_v45 = vshrl.u32 %v49_v37, 16  ;;  %v758_v47 = vld [vmem:[#allocation2 + $0x2c] sm:$0xff]  ;;  %v757_v59 = vld [vmem:[#allocation2 + $0x24] sm:$0xff]  ;;  %v772_v25 = vld [vmem:[%s1051_s3 + $0x38] sm:$0xff] }
   0xf   :  { %v82_v39 = vor.u32 %v81_v29, %v77_v28  ;;  %v263_v44 = vsel %vm919_vm6, %v673_v31, %v262_v24  ;;  %v93_v46 = vshll.u32 %v49_v37, 16  ;;  %v754_v48 = vld [vmem:[#allocation2 + $0x8] sm:$0xff]  ;;  %v99_v51 = vshll.u32 %v50_v41, 16  ;;  %v762_v53 = vld [vmem:[#allocation2 + $0x50] sm:$0xff]  ;;  %v753_v60 = vld [vmem:[#allocation2] sm:$0xff]  ;;  %453 = vmatpush.bf16.msra.mxu3 %v772_v25  ;;  %s616_s17 = sshll.u32 %s1056_s8, 4  ;;  %s617_s17 = int_to_ptr.hbm [resolvable:$true] %s616_s17 }
  0x10   :  { %171 = vmatpush.bf16.msra.mxu0 %v760_v9  ;;  %236 = vmatpush.bf16.msra.mxu1 %v756_v10  ;;  %v73_v42 = vrot.slane %v72_v34, 4  ;;  %v266_v50 = vsel %vm919_vm6, %v264_v35, %v265_v36  ;;  %v103_v52 = vshrl.u32 %v50_v41, 16  ;;  %v284_v57 = vunpack.c.l.b16 %v263_v44  ;;  %v761_v1 = vld [vmem:[#allocation2 + $0x48] sm:$0xff]  ;;  %v61_v2 = vld [vmem:[%s1048_s0 + $0x14] sm:$0x1]  ;;  %v751_v4 = vld [vmem:[%s1048_s0] sm:$0xff] }
  0x11   :  { %330 = vmatpush.bf16.msra.mxu2 %v764_v14  ;;  %v83_v43 = vrot.slane %v82_v39, 4  ;;  %v285_v58 = vunpack.c.l.b16 %v266_v50  ;;  %v92_v61 = vrot.slane %v90_v45, 4  ;;  %v95_v62 = vrot.slane %v93_v46, 5  ;;  %v252_v10 = vld [vmem:[%s1048_s0 + $0xc] sm:$0xe]  ;;  %v771_v29 = vld [vmem:[%s1051_s3 + $0x30] sm:$0xff] }
  0x12   :  { %v78_v49 = vsel %vm913_vm5, %v73_v42, %v77_v28  ;;  %v101_v63 = vrot.slane %v99_v51, 5  ;;  %v105_v0 = vrot.slane %v103_v52, 4  ;;  %vm156_vm7 = vcmask 588800   ;;  %v752_v27 = vld [vmem:[%s1048_s0 + $0xc] sm:$0xff]  ;;  %v765_v52 = vld [vmem:[%s1051_s3] sm:$0xff]  ;;  %s849_s8 = smov 128  }
  0x13   :  { %v88_v54 = vsel %vm913_vm5, %v83_v43, %v87_v40  ;;  %v123_v55 = vunpack.c.l.b16 %v78_v49  ;;  %v288_v5 = vpack.c.b16 %v285_v58, %v284_v57  ;;  %v96_v6 = vor.u32 %v95_v62, %v92_v61  ;;  %454 = vmatpush.bf16.msra.mxu3 %v771_v29  ;;  %v783_v40 = vld [vmem:[%s1050_s2] ss:$0 sm:$0xff]  ;;  %v767_v42 = vld [vmem:[%s1051_s3 + $0x10] sm:$0xff]  ;;  %v766_v46 = vld [vmem:[%s1051_s3 + $0x8] sm:$0xff]  ;;  %s850_s18 = smov 8  }
  0x14   :  { %172 = vmatpush.bf16.msra.mxu0 %v759_v32  ;;  %237 = vmatpush.bf16.msra.mxu1 %v755_v33  ;;  %v124_v56 = vunpack.c.l.b16 %v88_v54  ;;  %v106_v7 = vor.u32 %v105_v0, %v101_v63  ;;  %v109_v8 = vshll.u32 %v61_v2, 16  ;;  %v269_v9 = vrot.slane %v50_v41, 5  ;;  %v770_v32 = vld [vmem:[%s1051_s3 + $0x28] sm:$0xff]  ;;  %v769_v33 = vld [vmem:[%s1051_s3 + $0x20] sm:$0xff]  ;;  %v775_v62 = vld [vmem:[%s1053_s5 + $0x10] sm:$0xff] }
  0x15   :  { %331 = vmatpush.bf16.msra.mxu2 %v763_v38  ;;  %v97_v11 = vrot.slane %v96_v6, 4  ;;  %v674_v14 = vrot.slane %v252_v10, 9  ;;  %v272_v16 = vrot.slane %v61_v2, 5  ;;  %v768_v38 = vld [vmem:[%s1051_s3 + $0x18] sm:$0xff]  ;;  %vm401_vm8 = vcmask 1041409  }
  0x16   :  { %v127_v3 = vpack.c.b16 %v124_v56, %v123_v55  ;;  %v107_v12 = vrot.slane %v106_v7, 4  ;;  %v111_v13 = vrot.slane %v109_v8, 5  ;;  %v271_v15 = vrot.slane %v269_v9, 4 }
  0x17   :  { %v102_v17 = vsel %vm913_vm5, %v97_v11, %v101_v63  ;;  %v270_v19 = vsel %vm919_vm6, %v674_v14, %v269_v9  ;;  %455 = vmatpush.bf16.msra.mxu3 %v770_v32  ;;  %v773_v63 = vld [vmem:[%s1053_s5] sm:$0xff]  ;;  %vm488_vm9 = vcmask 261120   ;;  %vm560_vm10 = vcmask 1041408  }
  0x18   :  { %173 = vmatpush.bf16.msra.mxu0 %v758_v47  ;;  %238 = vmatpush.bf16.msra.mxu1 %v754_v48  ;;  %v112_v18 = vsel %vm913_vm5, %v107_v12, %v111_v13  ;;  %v273_v20 = vsel %vm919_vm6, %v271_v15, %v272_v16  ;;  %v125_v21 = vunpack.c.l.b16 %v102_v17  ;;  %v286_v23 = vunpack.c.l.b16 %v270_v19 }
  0x19   :  { %332 = vmatpush.bf16.msra.mxu2 %v762_v53  ;;  %v126_v22 = vunpack.c.l.b16 %v112_v18  ;;  %v287_v24 = vunpack.c.l.b16 %v273_v20  ;;  %vm556_vm11 = vcmask 31744  }
  0x1b   :  { %v128_v26 = vpack.c.b16 %v126_v22, %v125_v21  ;;  %v289_v28 = vpack.c.b16 %v287_v24, %v286_v23  ;;  %456 = vmatpush.bf16.msra.mxu3 %v769_v33  ;;  %v748_v33 = vld [vmem:[%s1055_s7 + $0x2] sm:$0x3] }
  0x1c   :  { %174 = vmatpush.bf16.msra.mxu0 %v757_v59  ;;  %239 = vmatpush.bf16.msra.mxu1 %v753_v60  ;;  %v776_v59 = vld [vmem:[%s1053_s5 + $0x18] sm:$0xff]  ;;  %v774_v60 = vld [vmem:[%s1053_s5 + $0x8] sm:$0xff] }
  0x1d   :  { %333 = vmatpush.bf16.msra.mxu2 %v761_v1 }
  0x1f   :  { %645 = vmatmul.msk.bf16.vlgmr.msra.gmra.mxu0 %vm156_vm7, %v127_v3  ;;  %671 = vmatmul.msk.bf16.vlgmr.msra.gmra.mxu1 %vm156_vm7, %v751_v4 }
  0x20   :  { %691 = vmatmul.msk.bf16.vlgmr.msra.gmra.mxu2 %vm156_vm7, %v288_v5  ;;  %457 = vmatpush.bf16.msra.mxu3 %v768_v38 }
  0x21   :  { %533 = vmatpush.bf16.msrb.mxu0 %v776_v59 }
  0x24   :  { %458 = vmatpush.bf16.msra.mxu3 %v767_v42 }
  0x25   :  { %534 = vmatpush.bf16.msrb.mxu0 %v775_v62 }
  0x28   :  { %459 = vmatpush.bf16.msra.mxu3 %v766_v46 }
  0x2c   :  { %460 = vmatpush.bf16.msra.mxu3 %v765_v52 }
  0x2f   :  { %646 = vmatmul.msk.bf16.gmra.mxu0 %vm156_vm7, %v128_v26  ;;  %672 = vmatmul.msk.bf16.gmra.mxu1 %vm156_vm7, %v752_v27  ;;  %v784_v26 = vld [vmem:[%s1052_s4] ss:$0 sm:$0xff] }
  0x30   :  { %692 = vmatmul.msk.bf16.gmra.mxu2 %vm156_vm7, %v289_v28  ;;  %498 = vmatpush.bf16.msrb.mxu3 %v774_v60 }
  0x34   :  { %499 = vmatpush.bf16.msrb.mxu3 %v773_v63 }
  0x9c   :  { %v176_v30 = vpop.f32.mrf.mxu0  ;;  %v241_v31 = vpop.f32.mrf.mxu1 }
  0x9d   :  { %v242_v35 = vadd.f32 %v241_v31, %v176_v30  ;;  %v551_v31 = vld [vmem:[%s1055_s7] sm:$0x3] }
  0x9e   :  { %v581_v32 = vsel %vm560_vm10, %v551_v31, 0 }
  0x9f   :  { %590 = vmatpush.bf16.msrb.mxu2 %v581_v32 }
  0xa3   :  { %v335_v34 = vpop.f32.mrf.mxu2 }
  0xa4   :  { %v178_v36 = vpop.f32.mrf.mxu0  ;;  %v243_v37 = vpop.f32.mrf.mxu1  ;;  %v345_v39 = vadd.f32 %v335_v34, %v242_v35  ;;  %v562_v34 = vsel %vm560_vm10, %v748_v33, 0 }
  0xa5   :  { %v244_v41 = vadd.f32 %v243_v37, %v178_v36  ;;  %571 = vmatpush.bf16.msrb.mxu1 %v562_v34  ;;  %v785_v36 = vld [vmem:[%s1054_s6 + $0x1] ss:$0 sm:$0xff]  ;;  %v786_v37 = vld [vmem:[%s1054_s6] ss:$0 sm:$0xff]  ;;  %s848_s6 = smov [#allocation5]  }
  0xa6   :  { %v984_v44 = vadd.f32 %v783_v40, %v345_v39  ;;  %s614_s7 = sshll.u32 %s848_s6, 4  ;;  %s615_s7 = int_to_ptr.vmem [resolvable:$true] %s614_s7 }
  0xa8   :  { %v357_v50 = vmax.f32 %v984_v44, 0.0 }
  0xab   :  { %v337_v43 = vpop.f32.mrf.mxu2 }
  0xac   :  { %v346_v45 = vadd.f32 %v337_v43, %v244_v41  ;;  %v181_v47 = vpop.f32.mrf.mxu0  ;;  %v246_v48 = vpop.f32.mrf.mxu1 }
  0xad   :  { %v247_v55 = vadd.f32 %v246_v48, %v181_v47 }
  0xae   :  { %v989_v49 = vadd.f32 %v783_v40, %v346_v45 }
  0xb0   :  { %v358_v51 = vmax.f32 %v989_v49, 0.0 }
  0xb2   :  { %v361_v53 = vadd.f32 %v358_v51, %v357_v50 }
  0xb3   :  { %v340_v54 = vpop.f32.mrf.mxu2 }
  0xb4   :  { %v362_v56 = vrot.slane %v361_v53, 4  ;;  %v183_v57 = vpop.f32.mrf.mxu0  ;;  %v248_v58 = vpop.f32.mrf.mxu1  ;;  %v347_v61 = vadd.f32 %v340_v54, %v247_v55 }
  0xb5   :  { %v249_v1 = vadd.f32 %v248_v58, %v183_v57 }
  0xb6   :  { %v363_v0 = vadd.f32 %v362_v56, %v361_v53  ;;  %v1012_v3 = vadd.f32 %v783_v40, %v347_v61 }
  0xb8   :  { %v364_v5 = vrot.slane %v363_v0, 2  ;;  %v359_v7 = vmax.f32 %v1012_v3, 0.0 }
  0xba   :  { %v365_v9 = vadd.f32 %v364_v5, %v363_v0 }
  0xbb   :  { %v342_v2 = vpop.f32.mrf.mxu2 }
  0xbc   :  { %v348_v4 = vadd.f32 %v342_v2, %v249_v1  ;;  %v366_v13 = vrot.slane %v365_v9, 1 }
  0xbe   :  { %v1014_v6 = vadd.f32 %v783_v40, %v348_v4  ;;  %v367_v16 = vadd.f32 %v366_v13, %v365_v9 }
  0xc0   :  { %v360_v8 = vmax.f32 %v1014_v6, 0.0  ;;  %v375_v19 = vpack.c.bf16 %v367_v16, %v367_v16 }
  0xc2   :  { %v368_v10 = vadd.f32 %v360_v8, %v359_v7  ;;  %v399_v21 = vunpack.c.l.b16 %v375_v19 }
  0xc4   :  { %v369_v11 = vrot.slane %v368_v10, 4 }
  0xc6   :  { %v370_v12 = vadd.f32 %v369_v11, %v368_v10 }
  0xc8   :  { %v371_v14 = vrot.slane %v370_v12, 2 }
  0xca   :  { %v372_v15 = vadd.f32 %v371_v14, %v370_v12 }
  0xcc   :  { %v373_v17 = vrot.slane %v372_v15, 1 }
  0xce   :  { %v374_v18 = vadd.f32 %v373_v17, %v372_v15 }
  0xd0   :  { %v376_v20 = vpack.c.bf16 %v374_v18, %v374_v18 }
  0xd2   :  { %v400_v22 = vunpack.c.l.b16 %v376_v20 }
  0xd4   :  { %v402_v23 = vsel %vm401_vm8, %v400_v22, %v399_v21 }
  0xd5   :  { %v403_v24 = vpack.c.b16 %v402_v23, %v402_v23 }
  0xd7   :  { %461 = vmatmul.bf16.vlgmr.msra.gmra.mxu3 %v403_v24 }
 0x15a   :  { %v462_v27 = vpop.f32.mrf.mxu3 }
 0x15b   :  { %v463_v28 = vadd.f32 %v784_v26, %v462_v27 }
 0x15d   :  { %v466_v25 = vmax.f32 %v463_v28, 0.0 }
 0x15f   :  { %v467_v29 = vpack.c.bf16 %v466_v25, %v466_v25 }
 0x161   :  { %733 = vmatmul.msk.bf16.vlgmr.msrb.gmra.mxu3 %vm488_vm9, %v467_v29  ;;  %747 = vmatmul.msk.bf16.vlgmr.msrb.gmra.mxu0 %vm488_vm9, %v467_v29 }
 0x162   :  { %v464_v30 = vpop.f32.mrf.mxu3 }
 0x1de   :  { %v536_v35 = vpop.f32.mrf.mxu0 }
 0x1df   :  { %v537_v39 = vadd.f32 %v785_v36, %v536_v35 }
 0x1e4   :  { %v501_v38 = vpop.f32.mrf.mxu3 }
 0x1e5   :  { %v502_v40 = vadd.f32 %v786_v37, %v501_v38 }
 0x1e6   :  { %v538_v41 = vpop.f32.mrf.mxu0 }
 0x1e7   :  { %v540_v42 = vmax.f32 %v502_v40, %v537_v39 }
 0x1e9   :  { %v541_v43 = vsub.f32 %v502_v40, %v540_v42  ;;  %v544_v45 = vsub.f32 %v537_v39, %v540_v42 }
 0x1eb   :  { %v542_v46 = vmul.f32 1.442695, %v541_v43  ;;  %v545_v47 = vmul.f32 1.442695, %v544_v45 }
 0x1ec   :  { %v503_v48 = vpop.f32.mrf.mxu3 }
 0x1ed   :  { %787 = vpow2.f32 %v542_v46 }
 0x1ee   :  { %789 = vpow2.f32 %v545_v47 }
 0x1f3   :  { %v788_v52 = vpop.eup %787 }
 0x1f4   :  { %v790_v53 = vpop.eup %789 }
 0x1f5   :  { %v547_v54 = vadd.f32 %v790_v53, %v788_v52 }
 0x1f7   :  { %791 = vrcp.f32 %v547_v54 }
 0x1fd   :  { %v792_v55 = vpop.eup %791 }
 0x1fe   :  { %v552_v56 = vmul.f32 %v792_v55, %v790_v53  ;;  %v549_v57 = vmul.f32 %v792_v55, %v788_v52 }
 0x200   :  { %v553_v58 = vpack.c.bf16 %v552_v56, %v552_v56  ;;  %v550_v59 = vpack.c.bf16 %v549_v57, %v549_v57 }
 0x202   :  { %749 = vmatmul.msk.bf16.vlgmr.msrb.gmra.mxu1 %vm556_vm11, %v553_v58  ;;  %750 = vmatmul.msk.bf16.vlgmr.msrb.gmra.mxu2 %vm556_vm11, %v550_v59 }
 0x27f   :  { %v573_v60 = vpop.f32.mrf.mxu1 }
 0x285   :  { %v592_v61 = vpop.f32.mrf.mxu2 }
 0x286   :  { %v593_v62 = vadd.f32 %v592_v61, %v573_v60 }
 0x287   :  { %v575_v63 = vpop.f32.mrf.mxu1 }
 0x288   :  { %v597_v0 = vrot.slane %v593_v62, 1  ;;  %v598_v1 = vperm.slane %v593_v62, 0 }
 0x28a   :  { %v599_v2 = vperm.slane %v597_v0, 0  ;;  %v602_v4 = vmul.f32 %v598_v1, %v357_v50  ;;  %v603_v5 = vmul.f32 %v598_v1, %v358_v51 }
 0x28c   :  { %v604_v9 = vmul.f32 %v599_v2, %v359_v7  ;;  %v605_v10 = vmul.f32 %v599_v2, %v360_v8  ;;  %606 = vst [vmem:[#allocation5] sm:$0xff] %v602_v4 }
 0x28d   :  { %607 = vst [vmem:[#allocation5 + $0x8] sm:$0xff] %v603_v5  ;;  %v594_v11 = vpop.f32.mrf.mxu2 }
 0x28e   :  { %608 = vst [vmem:[#allocation5 + $0x10] sm:$0xff] %v604_v9 }
 0x28f   :  { %609 = vst [vmem:[#allocation5 + $0x18] sm:$0xff] %v605_v10 }
 0x290   :  { %622 = dma.vmem_to_hbm [thread:$0]  %s615_s7, 512, %s617_s17, [#allocation4], %s849_s8, %s849_s8, %s850_s18  }
 0x291   :  { %843 = dma.done.wait [#allocation4], 512  }
 0x292   :  { %844 = vsyncadd [#allocation4], 4294966784 }
 0x293   :  { %627 = vsyncpa [#allocation3], 1 }
 0x294   :  { %628 = vsyncpa [#allocation4], 1 }

</bundles_post_ra>
